<compile_context>
chip_gen: v6e
topology: v6e:2x2x1
jax: 0.10.0
libtpu: 0.0.40
codegen_flags: <defaults>
</compile_context>

<pallas_src>
import functools

import jax
import jax.numpy as jnp
from jax import lax
from jax.experimental import pallas as pl
from jax.experimental.pallas import tpu as pltpu

NUM_UNITS = 32   # num_units (output dimensionality), matches hidden=32


def _sinusoid_table(T, num_units):
    """position_enc[pos, i] = pos / 10000**(2*i/num_units); even cols sin, odd cols cos.

    Mirrors the torch module's host-side table construction (python list
    comprehension + in-place sin/cos on even/odd column slices).
    """
    pos = jnp.arange(T, dtype=jnp.float32)[:, None]                 # (T, 1)
    i = jnp.arange(num_units, dtype=jnp.float32)[None, :]           # (1, D)
    angle = pos / jnp.power(10000.0, 2.0 * i / float(num_units))    # (T, D)
    even = (jnp.arange(num_units)[None, :] % 2) == 0
    return jnp.where(even, jnp.sin(angle), jnp.cos(angle)).astype(jnp.float32)


def _pos_enc_kernel(table_ref, out_ref, *, num_units, zeros_pad, scale):
    """Fused embedding lookup + zero-pad of position 0 + sqrt(D) scaling.

    table_ref : (1, T*D) flattened sinusoid table (lane-dense).
    out_ref   : (N, T*D) lane-dense output; wrapper reshapes to (N, T, D).

    position_ind = arange(T) repeated over the batch, so the embedding gather
    is just a broadcast of the (zero-padded, scaled) table across N.
    """
    n, td = out_ref.shape
    row = table_ref[...]                                            # (1, T*D)
    if zeros_pad:
        # lookup_table row 0 (position 0) is forced to zero; in the flattened
        # (T*D,) row-major layout that is the first `num_units` columns.
        col = lax.broadcasted_iota(jnp.int32, (1, td), 1)
        row = jnp.where(col < num_units, 0.0, row)
    if scale:
        row = row * (float(num_units) ** 0.5)
    out_ref[...] = jnp.broadcast_to(row, (n, td))


def positional_encoding(inputs, num_units=NUM_UNITS, zeros_pad=True, scale=True):
    """Forward pass of the torch `positional_encoding` module."""
    N, T = inputs.shape[0], inputs.shape[1]
    TD = T * num_units
    table_flat = _sinusoid_table(T, num_units).reshape(1, TD)       # lane-dense operand

    kernel = functools.partial(
        _pos_enc_kernel, num_units=num_units, zeros_pad=zeros_pad, scale=scale)

    out_flat = pl.pallas_call(
        kernel,
        out_shape=jax.ShapeDtypeStruct((N, TD), jnp.float32),
        grid=(1,),   # single step: whole batch at once, no per-batch grid overhead
        in_specs=[pl.BlockSpec((1, TD), lambda i: (0, 0))],
        out_specs=pl.BlockSpec((N, TD), lambda i: (0, 0)),
        compiler_params=pltpu.CompilerParams(dimension_semantics=("arbitrary",)),
    )(table_flat)
    return out_flat.reshape(N, T, num_units)


def _reference(inputs, num_units, zeros_pad=True, scale=True):
    """Pure-JAX replica of the torch forward, for in-script verification."""
    N, T = inputs.shape[0], inputs.shape[1]
    table = _sinusoid_table(T, num_units)
    if zeros_pad:
        table = table.at[0].set(0.0)
    out = jnp.broadcast_to(table[None], (N, T, num_units))
    if scale:
        out = out * (float(num_units) ** 0.5)
    return out


if __name__ == "__main__":
    key = jax.random.PRNGKey(0)
    N, T = 2, 8
    # token ids — the module only uses their shape (N, T)
    inputs = jax.random.randint(key, (N, T), 0, 100, dtype=jnp.int32)

    out = positional_encoding(inputs, num_units=NUM_UNITS, zeros_pad=True, scale=True)
    out = jax.block_until_ready(out)

    assert out.shape == (N, T, NUM_UNITS)
    ref = _reference(inputs, NUM_UNITS, zeros_pad=True, scale=True)
    assert bool(jnp.allclose(out, ref, atol=1e-6, rtol=1e-6))
    assert bool(jnp.all(out[:, 0, :] == 0.0))        # zeros_pad on position 0
    print("KERNEL_OK")
</pallas_src>

<mosaic_0001>
module attributes {stable_mosaic.version = 11 : i64} {
  func.func @_pos_enc_kernel(%arg0: i32, %arg1: memref<1x256xf32, #tpu.memory_space<vmem>>, %arg2: memref<2x256xf32, #tpu.memory_space<vmem>>) attributes {dimension_semantics = [#tpu.dimension_semantics<arbitrary>], iteration_bounds = array<i64: 1>, scalar_prefetch = 0 : i64, scratch_operands = 0 : i64, tpu.core_type = #tpu.core_type<tc>, window_params = [{pipeline_mode = #tpu.pipeline_mode<synchronous>, transform_indices = @transform_0, window_bounds = array<i64: 1, 256>}, {pipeline_mode = #tpu.pipeline_mode<synchronous>, transform_indices = @transform_1, window_bounds = array<i64: 2, 256>}]} {
    %c0 = arith.constant 0 : index
    %c0_0 = arith.constant 0 : index
    %0 = vector.load %arg1[%c0, %c0_0] : memref<1x256xf32, #tpu.memory_space<vmem>>, vector<1x256xf32>
    %1 = tpu.iota {dimensions = array<i32: 1>} : vector<1x256xi32>
    %c32_i32 = arith.constant 32 : i32
    %2 = vector.broadcast %c32_i32 : i32 to vector<1x256xi32>
    %3 = arith.cmpi slt, %1, %2 : vector<1x256xi32>
    %cst = arith.constant 0.000000e+00 : f32
    %4 = vector.broadcast %cst : f32 to vector<1x256xf32>
    %5 = arith.select %3, %4, %0 : vector<1x256xi1>, vector<1x256xf32>
    %cst_1 = arith.constant 5.65685415 : f32
    %6 = vector.broadcast %cst_1 : f32 to vector<1x256xf32>
    %7 = arith.mulf %5, %6 : vector<1x256xf32>
    %8 = vector.shape_cast %7 : vector<1x256xf32> to vector<1x256xf32>
    %9 = vector.broadcast %8 : vector<1x256xf32> to vector<2x256xf32>
    %c0_2 = arith.constant 0 : index
    %c0_3 = arith.constant 0 : index
    %10 = vector.load %arg2[%c0_2, %c0_3] : memref<2x256xf32, #tpu.memory_space<vmem>>, vector<2x256xf32>
    tpu.vector_store %arg2[%c0_2, %c0_3], %9 {strides = array<i32>} : memref<2x256xf32, #tpu.memory_space<vmem>>, vector<2x256xf32>,
    return
  }
  func.func @transform_0(%arg0: i32) -> (i32, i32) {
    %c0_i32 = arith.constant 0 : i32
    %c0_i32_0 = arith.constant 0 : i32
    %c0_i32_1 = arith.constant 0 : i32
    return %c0_i32, %c0_i32_0 : i32, i32
  }
  func.func @transform_1(%arg0: i32) -> (i32, i32) {
    %c0_i32 = arith.constant 0 : i32
    %c0_i32_0 = arith.constant 0 : i32
    %c0_i32_1 = arith.constant 0 : i32
    return %c0_i32, %c0_i32_0 : i32, i32
  }
}

</mosaic_0001>

<bundles_post_ra>
// kernel: tpu_custom_call.1
= control target key start
LH: loop header
LB: loop body
LE: loop exit
PB: predicated region body
PF: predicated region fallthrough
CT: control target
= control target key end

     0   :  { %6 = vsyncpa [#allocation3], 0  ;;  %s142_s0 = inlined_call_operand.hbm [shape: f32[1,256], index: 0, kind: input, shape index: {}]   ;;  %s143_s1 = inlined_call_operand.hbm [shape: f32[2,256], index: 1, kind: output, shape index: {}]  }
   0x1   :  { %7 = vsyncpa [#allocation4], 0  ;;  %s124_s6 = smov [#allocation2]  }
   0x2   :  { %s14_s7 = sshll.u32 %s124_s6, 4  ;;  %s15_s7 = int_to_ptr.vmem [resolvable:$true] %s14_s7 }
   0x3   :  { %s88_s8 = scalar_lea.vmem %s15_s7, 32  ;;  %p93_p1 = scmp.lt.s32.totalorder %s15_s7, %s15_s7 }
   0x4   :  { %p89_p0 = scmp.ne.s32.totalorder %s15_s7, %s88_s8  ;;  %p94_p2 = scmp.lt.s32.totalorder %s88_s8, %s88_s8 }
   0x6   :  { %p95_p3 = por %p94_p2, %p93_p1 }
   0x8   :  { %p96_p4 = pnand %p95_p3, %p89_p0 }
   0xa   :  { %99 = shalt.err (!%p96_p4)
}
   0xb   :  { %17 = dma.hbm_to_vmem [thread:$0]  %s142_s0, 32, %s15_s7, [#allocation3]  }
   0xc   :  { %120 = dma.done.wait [#allocation3], 32  }
   0xd   :  { %121 = vsyncadd [#allocation3], 4294967264  ;;  %v22_v0 = vlaneseq  ;;  %v21_v5 = vld [vmem:[#allocation2] sm:$0x3]  ;;  %s125_s11 = smov [#allocation5]  }
   0xe   :  { %s68_s12 = sshll.u32 %s125_s11, 4  ;;  %s69_s12 = int_to_ptr.vmem [resolvable:$true] %s68_s12 }
   0xf   :  { %v29_v1 = vshrl.u32 %v22_v0, 7  ;;  %v23_v2 = vand.u32 127, %v22_v0  ;;  %s100_s0 = scalar_lea.vmem %s69_s12, 64  ;;  %p105_p6 = scmp.lt.s32.totalorder %s69_s12, %s69_s12 }
  0x10   :  { %p101_p5 = scmp.ne.s32.totalorder %s69_s12, %s100_s0  ;;  %p106_p7 = scmp.lt.s32.totalorder %s100_s0, %s100_s0 }
  0x11   :  { %v30_v3 = vsub.s32 0, %v29_v1  ;;  %v34_v4 = vsub.s32 1, %v29_v1  ;;  %vm25_vm0 = vcmp.lt.s32.totalorder %v23_v2, 32 }
  0x12   :  { %p107_p8 = por %p106_p7, %p105_p6 }
  0x13   :  { %v31_v6 = vrot.slane %v21_v5, %v30_v3  ;;  %v35_v7 = vrot.slane %v21_v5, %v34_v4 }
  0x14   :  { %p108_p9 = pnand %p107_p8, %p101_p5 }
  0x15   :  { %v38_v8 = vsel %vm25_vm0, 0.0, %v31_v6  ;;  %v41_v9 = vmul.f32 5.656854, %v35_v7 }
  0x16   :  { %v40_v10 = vmul.f32 5.656854, %v38_v8 }
  0x17   :  { %v49_v11 = vrot.slane %v41_v9, %v30_v3 }
  0x18   :  { %v45_v12 = vrot.slane %v40_v10, %v30_v3 }
  0x1a   :  { %v52_v13 = vcombine.low %v45_v12, %v49_v11 }
  0x1c   :  { %77 = vst.sshfl [vmem:[#allocation5] sm:$0x33 pattern:$0x76325410] %v52_v13 }
  0x1d   :  { %111 = shalt.err (!%p108_p9)
}
  0x1e   :  { %71 = dma.vmem_to_hbm [thread:$0]  %s69_s12, 64, %s143_s1, [#allocation4]  }
  0x1f   :  { %122 = dma.done.wait [#allocation4], 64  }
  0x20   :  { %123 = vsyncadd [#allocation4], 4294967232 }
  0x21   :  { %75 = vsyncpa [#allocation3], 1 }
  0x22   :  { %76 = vsyncpa [#allocation4], 1 }

</bundles_post_ra>
